<compile_context>
chip_gen: v6e
topology: v6e:2x2x1
jax: 0.10.0
libtpu: 0.0.40
codegen_flags: <defaults>
</compile_context>

<pallas_src>
import jax
import jax.numpy as jnp
from jax.experimental import pallas as pl
from jax.experimental.pallas import tpu as pltpu


def _critic_kernel(state_ref, action_ref, w1s_ref, w1a_ref, b1_ref,
                   w2_ref, b2_ref, w3_ref, b3_ref, out_ref):
    # layer 1: split matmul replaces concat([state, action], 1) @ W1; cast the
    # f32 activations to the weight dtype only at the MXU operand (free VPU).
    h1 = (jnp.dot(state_ref[...].astype(w1s_ref.dtype), w1s_ref[...],
                  preferred_element_type=jnp.float32)
          + jnp.dot(action_ref[...].astype(w1a_ref.dtype), w1a_ref[...],
                    preferred_element_type=jnp.float32)
          + b1_ref[...])
    h1 = jnp.maximum(h1, 0.0)                       # f32 VPU (v5e has no bf16 VPU)

    # layer 2: cast only at the MXU input, keep elementwise math in f32
    h2 = jnp.dot(h1.astype(w2_ref.dtype), w2_ref[...],
                 preferred_element_type=jnp.float32) + b2_ref[...]
    h2 = jnp.maximum(h2, 0.0)

    # layer 3 (H -> 1), emitted lane-dense: contract both operands' last (H)
    # dim (the q @ k^T contraction pattern), so the result is already a
    # (1, tb) row -- no masked (tb, 1) store, no sublane->lane relayout.
    q_row = jnp.einsum('oh,bh->ob', w3_ref[...], h2.astype(w3_ref.dtype),
                       preferred_element_type=jnp.float32)
    out_ref[0] = (q_row + b3_ref[...]).astype(out_ref.dtype)


def _round_up(x, m):
    return ((x + m - 1) // m) * m


def critic_forward(state, action, params, *, block_batch=512):
    """state: (B, state_dim) f32, action: (B, action_dim) f32 -> q: (B, 1) f32."""
    w1s, w1a, b1, w2, b2, w3, b3 = params
    B, state_dim = state.shape
    action_dim = action.shape[1]

    # Batch tile: multiple of 8 sublanes; large tiles amortize the ~0.35us/step
    # overhead; >=2 tiles whenever B > 8 so the "parallel" axis can shard the
    # batch across both v7x TensorCores (no effect on single-TC v5e/v6e).
    # (For very large B on v6e/v7x, 256-multiples of tb fill the 256-wide MXU.)
    min_tiles = 2 if B > 8 else 1
    n_tiles = max(pl.cdiv(B, block_batch), min_tiles)
    tb = _round_up(pl.cdiv(B, n_tiles), 8)
    b_pad = n_tiles * tb

    # No wrapper-side dtype cast: inputs stay f32 in HBM and are cast inside
    # the kernel, avoiding extra full HBM read+write passes over the
    # activations. Pad only a ragged remainder (padded rows are sliced off;
    # rows are independent so zero rows just produce junk q in dropped rows).
    if b_pad != B:
        pad = ((0, b_pad - B), (0, 0))
        state = jnp.pad(state, pad)
        action = jnp.pad(action, pad)

    # Weights/biases resident across the whole grid (constant block index).
    resident = lambda arr: pl.BlockSpec(arr.shape, lambda i: (0, 0))
    # TODO(synk): on v7x (64 MiB VMEM) with a large hidden_dim, add
    # pipeline_mode=pl.Buffered(1) to these constant-index specs (the default
    # second buffer is wasted on never-changing blocks) and set
    # vmem_limit_bytes in CompilerParams.

    q_rows = pl.pallas_call(
        _critic_kernel,
        out_shape=jax.ShapeDtypeStruct((n_tiles, 1, tb), jnp.float32),
        grid=(n_tiles,),
        in_specs=[
            pl.BlockSpec((tb, state_dim), lambda i: (i, 0)),
            pl.BlockSpec((tb, action_dim), lambda i: (i, 0)),
            resident(w1s), resident(w1a), resident(b1),
            resident(w2), resident(b2),
            resident(w3), resident(b3),
        ],
        # Lane-dense output: one unmasked (1, tb) row per grid step instead of
        # a masked, strided (tb, 1) column.
        out_specs=pl.BlockSpec((1, 1, tb), lambda i: (i, 0, 0)),
        compiler_params=pltpu.CompilerParams(
            dimension_semantics=("parallel",)),   # shard batch tiles across TCs on v7x
    )(state, action, w1s, w1a, b1, w2, b2, w3, b3)

    return q_rows.reshape(b_pad, 1)[:B]


def critic_reference(state, action, params):
    """Plain-JAX reference with identical dtype handling to the kernel."""
    w1s, w1a, b1, w2, b2, w3, b3 = params
    s = state.astype(w1s.dtype)
    a = action.astype(w1a.dtype)
    h1 = jnp.maximum(
        jnp.dot(s, w1s, preferred_element_type=jnp.float32)
        + jnp.dot(a, w1a, preferred_element_type=jnp.float32) + b1, 0.0)
    h2 = jnp.maximum(
        jnp.dot(h1.astype(w2.dtype), w2, preferred_element_type=jnp.float32) + b2, 0.0)
    return jnp.dot(h2.astype(w3.dtype), w3.T,
                   preferred_element_type=jnp.float32) + b3


def init_params(key, state_dim, hidden_dim, action_dim,
                param_dtype=jnp.bfloat16, lane_multiple=128):
    """PyTorch-default-like uniform init. Weights stored (in, out); W1 pre-split
    along the concat axis; hidden width zero-padded to a lane multiple (extra
    zero rows/cols/bias entries -> mathematically identical); W3 stored as a
    (1, H_pad) row; biases kept f32."""
    in_dim = state_dim + action_dim
    ks = jax.random.split(key, 6)

    def lin(kw, kb, fan_in, fan_out):
        bound = 1.0 / (fan_in ** 0.5)
        w = jax.random.uniform(kw, (fan_in, fan_out), jnp.float32, -bound, bound)
        b = jax.random.uniform(kb, (1, fan_out), jnp.float32, -bound, bound)
        return w, b

    w1, b1 = lin(ks[0], ks[1], in_dim, hidden_dim)
    w2, b2 = lin(ks[2], ks[3], hidden_dim, hidden_dim)
    w3, b3 = lin(ks[4], ks[5], hidden_dim, 1)

    h_pad = _round_up(hidden_dim, lane_multiple)
    extra = h_pad - hidden_dim
    if extra:
        w1 = jnp.pad(w1, ((0, 0), (0, extra)))
        b1 = jnp.pad(b1, ((0, 0), (0, extra)))
        w2 = jnp.pad(w2, ((0, extra), (0, extra)))
        b2 = jnp.pad(b2, ((0, 0), (0, extra)))
        w3 = jnp.pad(w3, ((0, extra), (0, 0)))

    w1s = w1[:state_dim].astype(param_dtype)     # rows acting on state
    w1a = w1[state_dim:].astype(param_dtype)     # rows acting on action
    w3_row = w3.T.astype(param_dtype)            # (1, H_pad) for lane-dense projection
    return (w1s, w1a, b1, w2.astype(param_dtype), b2, w3_row, b3)


if __name__ == "__main__":
    state_dim, action_dim, hidden_dim, batch = 8, 4, 32, 8

    key = jax.random.PRNGKey(0)
    k_state, k_action, k_params = jax.random.split(key, 3)

    state = jax.random.normal(k_state, (batch, state_dim), jnp.float32)
    action = jax.random.normal(k_action, (batch, action_dim), jnp.float32)
    params = init_params(k_params, state_dim, hidden_dim, action_dim,
                         param_dtype=jnp.bfloat16)

    q = critic_forward(state, action, params)
    q = jax.block_until_ready(q)

    ref = critic_reference(state, action, params)
    assert q.shape == (batch, 1)
    assert jnp.allclose(q, ref, atol=2e-3, rtol=2e-3), (q, ref)

    print("KERNEL_OK")
</pallas_src>

<mosaic_0001>
module attributes {stable_mosaic.version = 11 : i64} {
  func.func @_critic_kernel(%arg0: i32, %arg1: memref<8x8xf32, #tpu.memory_space<vmem>>, %arg2: memref<8x4xf32, #tpu.memory_space<vmem>>, %arg3: memref<8x128xbf16, #tpu.memory_space<vmem>>, %arg4: memref<4x128xbf16, #tpu.memory_space<vmem>>, %arg5: memref<1x128xf32, #tpu.memory_space<vmem>>, %arg6: memref<128x128xbf16, #tpu.memory_space<vmem>>, %arg7: memref<1x128xf32, #tpu.memory_space<vmem>>, %arg8: memref<1x128xbf16, #tpu.memory_space<vmem>>, %arg9: memref<1x1xf32, #tpu.memory_space<vmem>>, %arg10: memref<1x1x8xf32, #tpu.memory_space<vmem>>) attributes {dimension_semantics = [#tpu.dimension_semantics<parallel>], iteration_bounds = array<i64: 1>, scalar_prefetch = 0 : i64, scratch_operands = 0 : i64, tpu.core_type = #tpu.core_type<tc>, window_params = [{transform_indices = @transform_0, window_bounds = array<i64: 8, 8>}, {transform_indices = @transform_1, window_bounds = array<i64: 8, 4>}, {pipeline_mode = #tpu.pipeline_mode<synchronous>, transform_indices = @transform_2, window_bounds = array<i64: 8, 128>}, {pipeline_mode = #tpu.pipeline_mode<synchronous>, transform_indices = @transform_3, window_bounds = array<i64: 4, 128>}, {pipeline_mode = #tpu.pipeline_mode<synchronous>, transform_indices = @transform_4, window_bounds = array<i64: 1, 128>}, {pipeline_mode = #tpu.pipeline_mode<synchronous>, transform_indices = @transform_5, window_bounds = array<i64: 128, 128>}, {pipeline_mode = #tpu.pipeline_mode<synchronous>, transform_indices = @transform_6, window_bounds = array<i64: 1, 128>}, {pipeline_mode = #tpu.pipeline_mode<synchronous>, transform_indices = @transform_7, window_bounds = array<i64: 1, 128>}, {pipeline_mode = #tpu.pipeline_mode<synchronous>, transform_indices = @transform_8, window_bounds = array<i64: 1, 1>}, {transform_indices = @transform_9, window_bounds = array<i64: 1, 1, 8>}]} {
    %c0 = arith.constant 0 : index
    %c0_0 = arith.constant 0 : index
    %0 = vector.load %arg1[%c0, %c0_0] : memref<8x8xf32, #tpu.memory_space<vmem>>, vector<8x8xf32>
    %1 = arith.truncf %0 : vector<8x8xf32> to vector<8x8xbf16>
    %c0_1 = arith.constant 0 : index
    %c0_2 = arith.constant 0 : index
    %2 = vector.load %arg3[%c0_1, %c0_2] : memref<8x128xbf16, #tpu.memory_space<vmem>>, vector<8x128xbf16>
    %cst = arith.constant dense<0.000000e+00> : vector<8x128xf32>
    %3 = tpu.matmul %1, %2, %cst {dimension_numbers = #tpu.dot_dimension_numbers<[1], [0], [0], [1], [0, 0, 1, 1], [], []>} : vector<8x8xbf16>, vector<8x128xbf16>, vector<8x128xf32> -> vector<8x128xf32>
    %c0_3 = arith.constant 0 : index
    %c0_4 = arith.constant 0 : index
    %4 = vector.load %arg2[%c0_3, %c0_4] : memref<8x4xf32, #tpu.memory_space<vmem>>, vector<8x4xf32>
    %5 = arith.truncf %4 : vector<8x4xf32> to vector<8x4xbf16>
    %c0_5 = arith.constant 0 : index
    %c0_6 = arith.constant 0 : index
    %6 = vector.load %arg4[%c0_5, %c0_6] : memref<4x128xbf16, #tpu.memory_space<vmem>>, vector<4x128xbf16>
    %cst_7 = arith.constant dense<0.000000e+00> : vector<8x128xf32>
    %7 = tpu.matmul %5, %6, %cst_7 {dimension_numbers = #tpu.dot_dimension_numbers<[1], [0], [0], [1], [0, 0, 1, 1], [], []>} : vector<8x4xbf16>, vector<4x128xbf16>, vector<8x128xf32> -> vector<8x128xf32>
    %8 = arith.addf %3, %7 : vector<8x128xf32>
    %c0_8 = arith.constant 0 : index
    %c0_9 = arith.constant 0 : index
    %9 = vector.load %arg5[%c0_8, %c0_9] : memref<1x128xf32, #tpu.memory_space<vmem>>, vector<1x128xf32>
    %10 = vector.broadcast %9 : vector<1x128xf32> to vector<8x128xf32>
    %11 = arith.addf %8, %10 : vector<8x128xf32>
    %cst_10 = arith.constant 0.000000e+00 : f32
    %12 = vector.broadcast %cst_10 : f32 to vector<8x128xf32>
    %13 = arith.maximumf %11, %12 : vector<8x128xf32>
    %14 = arith.truncf %13 : vector<8x128xf32> to vector<8x128xbf16>
    %c0_11 = arith.constant 0 : index
    %c0_12 = arith.constant 0 : index
    %15 = vector.load %arg6[%c0_11, %c0_12] : memref<128x128xbf16, #tpu.memory_space<vmem>>, vector<128x128xbf16>
    %cst_13 = arith.constant dense<0.000000e+00> : vector<8x128xf32>
    %16 = tpu.matmul %14, %15, %cst_13 {dimension_numbers = #tpu.dot_dimension_numbers<[1], [0], [0], [1], [0, 0, 1, 1], [], []>} : vector<8x128xbf16>, vector<128x128xbf16>, vector<8x128xf32> -> vector<8x128xf32>
    %c0_14 = arith.constant 0 : index
    %c0_15 = arith.constant 0 : index
    %17 = vector.load %arg7[%c0_14, %c0_15] : memref<1x128xf32, #tpu.memory_space<vmem>>, vector<1x128xf32>
    %18 = vector.broadcast %17 : vector<1x128xf32> to vector<8x128xf32>
    %19 = arith.addf %16, %18 : vector<8x128xf32>
    %cst_16 = arith.constant 0.000000e+00 : f32
    %20 = vector.broadcast %cst_16 : f32 to vector<8x128xf32>
    %21 = arith.maximumf %19, %20 : vector<8x128xf32>
    %c0_17 = arith.constant 0 : index
    %c0_18 = arith.constant 0 : index
    %22 = vector.load %arg8[%c0_17, %c0_18] : memref<1x128xbf16, #tpu.memory_space<vmem>>, vector<1x128xbf16>
    %23 = arith.truncf %21 : vector<8x128xf32> to vector<8x128xbf16>
    "tpu.trace_start"() <{level = 10 : i32, message = "oh,bh->ob"}> : () -> ()
    %cst_19 = arith.constant dense<0.000000e+00> : vector<1x8xf32>
    %24 = tpu.matmul %22, %23, %cst_19 {dimension_numbers = #tpu.dot_dimension_numbers<[1], [1], [0], [0], [0, 0, 1, 0], [], []>} : vector<1x128xbf16>, vector<8x128xbf16>, vector<1x8xf32> -> vector<1x8xf32>
    "tpu.trace_stop"() : () -> ()
    %c0_20 = arith.constant 0 : index
    %c0_21 = arith.constant 0 : index
    %25 = vector.load %arg9[%c0_20, %c0_21] : memref<1x1xf32, #tpu.memory_space<vmem>>, vector<1x1xf32>
    %26 = vector.broadcast %25 : vector<1x1xf32> to vector<1x8xf32>
    %27 = arith.addf %24, %26 : vector<1x8xf32>
    %c0_22 = arith.constant 0 : index
    %c0_23 = arith.constant 0 : index
    %c0_24 = arith.constant 0 : index
    %28 = vector.load %arg10[%c0_22, %c0_23, %c0_24] : memref<1x1x8xf32, #tpu.memory_space<vmem>>, vector<1x1x8xf32>
    %29 = vector.shape_cast %28 : vector<1x1x8xf32> to vector<1x8xf32>
    %30 = vector.shape_cast %27 : vector<1x8xf32> to vector<1x1x8xf32>
    tpu.vector_store %arg10[%c0_22, %c0_23, %c0_24], %30 {strides = array<i32>} : memref<1x1x8xf32, #tpu.memory_space<vmem>>, vector<1x1x8xf32>,
    return
  }
  func.func @transform_0(%arg0: i32) -> (i32, i32) {
    %c0_i32 = arith.constant 0 : i32
    %c0_i32_0 = arith.constant 0 : i32
    return %arg0, %c0_i32 : i32, i32
  }
  func.func @transform_1(%arg0: i32) -> (i32, i32) {
    %c0_i32 = arith.constant 0 : i32
    %c0_i32_0 = arith.constant 0 : i32
    return %arg0, %c0_i32 : i32, i32
  }
  func.func @transform_2(%arg0: i32) -> (i32, i32) {
    %c0_i32 = arith.constant 0 : i32
    %c0_i32_0 = arith.constant 0 : i32
    %c0_i32_1 = arith.constant 0 : i32
    return %c0_i32, %c0_i32_0 : i32, i32
  }
  func.func @transform_3(%arg0: i32) -> (i32, i32) {
    %c0_i32 = arith.constant 0 : i32
    %c0_i32_0 = arith.constant 0 : i32
    %c0_i32_1 = arith.constant 0 : i32
    return %c0_i32, %c0_i32_0 : i32, i32
  }
  func.func @transform_4(%arg0: i32) -> (i32, i32) {
    %c0_i32 = arith.constant 0 : i32
    %c0_i32_0 = arith.constant 0 : i32
    %c0_i32_1 = arith.constant 0 : i32
    return %c0_i32, %c0_i32_0 : i32, i32
  }
  func.func @transform_5(%arg0: i32) -> (i32, i32) {
    %c0_i32 = arith.constant 0 : i32
    %c0_i32_0 = arith.constant 0 : i32
    %c0_i32_1 = arith.constant 0 : i32
    return %c0_i32, %c0_i32_0 : i32, i32
  }
  func.func @transform_6(%arg0: i32) -> (i32, i32) {
    %c0_i32 = arith.constant 0 : i32
    %c0_i32_0 = arith.constant 0 : i32
    %c0_i32_1 = arith.constant 0 : i32
    return %c0_i32, %c0_i32_0 : i32, i32
  }
  func.func @transform_7(%arg0: i32) -> (i32, i32) {
    %c0_i32 = arith.constant 0 : i32
    %c0_i32_0 = arith.constant 0 : i32
    %c0_i32_1 = arith.constant 0 : i32
    return %c0_i32, %c0_i32_0 : i32, i32
  }
  func.func @transform_8(%arg0: i32) -> (i32, i32) {
    %c0_i32 = arith.constant 0 : i32
    %c0_i32_0 = arith.constant 0 : i32
    %c0_i32_1 = arith.constant 0 : i32
    return %c0_i32, %c0_i32_0 : i32, i32
  }
  func.func @transform_9(%arg0: i32) -> (i32, i32, i32) {
    %c0_i32 = arith.constant 0 : i32
    %c0_i32_0 = arith.constant 0 : i32
    %c0_i32_1 = arith.constant 0 : i32
    return %arg0, %c0_i32, %c0_i32_0 : i32, i32, i32
  }
}

</mosaic_0001>

<bundles_post_ra>
// kernel: tpu_custom_call.1
= control target key start
LH: loop header
LB: loop body
LE: loop exit
PB: predicated region body
PF: predicated region fallthrough
CT: control target
= control target key end

     0   :  { %s559_s0 = inlined_call_operand.vmem [shape: f32[8,8], index: 0, kind: input, shape index: {}]   ;;  %s560_s1 = inlined_call_operand.vmem [shape: f32[8,4], index: 1, kind: input, shape index: {}]   ;;  %s561_s2 = inlined_call_operand.vmem [shape: bf16[8,128], index: 2, kind: input, shape index: {}]   ;;  %s562_s3 = inlined_call_operand.vmem [shape: bf16[4,128], index: 3, kind: input, shape index: {}]   ;;  %s563_s4 = inlined_call_operand.vmem [shape: f32[1,128], index: 4, kind: input, shape index: {}]   ;;  %s564_s5 = inlined_call_operand.hbm [shape: bf16[128,128], index: 5, kind: input, shape index: {}]   ;;  %s565_s6 = inlined_call_operand.vmem [shape: f32[1,128], index: 6, kind: input, shape index: {}]   ;;  %s566_s7 = inlined_call_operand.vmem [shape: bf16[1,128], index: 7, kind: input, shape index: {}]   ;;  %s567_s8 = inlined_call_operand.<no memory space> [shape: f32[1,1], index: 8, kind: input, shape index: {}]   ;;  %s568_s9 = inlined_call_operand.hbm [shape: f32[1,1,8], index: 9, kind: output, shape index: {}]  }
   0x1   :  { %v14_v0 = vstv %s567_s8 }
   0x2   :  { %15 = vst [vmem:[#allocation2] sm:$0x1] %v14_v0 }
   0x3   :  { %16 = vsyncpa [#allocation4], 0 }
   0x4   :  { %17 = vsyncpa [#allocation5], 0  ;;  %s468_s11 = smov [#allocation3]  }
   0x5   :  { %s33_s12 = sshll.u32 %s468_s11, 4  ;;  %s34_s12 = int_to_ptr.vmem [resolvable:$true] %s33_s12 }
   0x6   :  { %s432_s13 = scalar_lea.vmem %s34_s12, 1024  ;;  %p437_p1 = scmp.lt.s32.totalorder %s34_s12, %s34_s12 }
   0x7   :  { %p433_p0 = scmp.ne.s32.totalorder %s34_s12, %s432_s13  ;;  %p438_p2 = scmp.lt.s32.totalorder %s432_s13, %s432_s13 }
   0x9   :  { %p439_p3 = por %p438_p2, %p437_p1 }
   0xb   :  { %p440_p4 = pnand %p439_p3, %p433_p0 }
   0xd   :  { %443 = shalt.err (!%p440_p4)
}
   0xe   :  { %s469_s14 = smov 64   ;;  %s470_s15 = smov 4  }
   0xf   :  { %39 = dma.hbm_to_vmem [thread:$0]  %s564_s5, 1024, %s34_s12, [#allocation4], %s469_s14, %s469_s14, %s470_s15  }
  0x10   :  { %464 = dma.done.wait [#allocation4], 1024  }
  0x11   :  { %465 = vsyncadd [#allocation4], 4294966272  ;;  %v471_v1 = vmov 0.0   ;;  %vm472_vm0 = vmmov 0   ;;  %vm60_vm1 = vcmask 1041408   ;;  %v53_v3 = vld [vmem:[%s560_s1] sm:$0xff]  ;;  %v282_v42 = vlaneseq }
  0x12   :  { %370 = vmatprep.subr.bf16.mxu1 %v471_v1  ;;  %372 = vmatprep.mubr.msk.bf16.mxu1 %vm472_vm0, %v471_v1  ;;  %v55_v2 = vld [vmem:[%s562_s3] sm:$0x3]  ;;  %vm108_vm2 = vcmask 1043456   ;;  %v54_v6 = vpack.c.bf16 %v53_v3, %v53_v3  ;;  %vm56_vm3 = vcmask 31744   ;;  %v417_v9 = vld [vmem:[#allocation3 + $0x30] sm:$0xff]   ;;  %v418_v11 = vld [vmem:[#allocation3 + $0x28] sm:$0xff]  }
  0x13   :  { %382 = vmatprep.subr.bf16.mxu0 %v471_v1  ;;  %398 = vmatprep.mubr.msk.bf16.mxu0 %vm472_vm0, %v471_v1  ;;  %v52_v4 = vld [vmem:[%s561_s2] sm:$0xf]  ;;  %v62_v5 = vsel %vm60_vm1, %v55_v2, 0  ;;  %vm104_vm4 = vcmask 64512   ;;  %v421_v15 = vld [vmem:[#allocation3 + $0x10] sm:$0xff]   ;;  %v422_v16 = vld [vmem:[#allocation3 + $0x8] sm:$0xff]  }
  0x14   :  { %v416_v7 = vld [vmem:[#allocation3 + $0x38] sm:$0xff]   ;;  %371 = vmatpush3.bf16.msra.mxu1 %v62_v5  ;;  %v110_v8 = vsel %vm108_vm2, %v52_v4, 0  ;;  %v419_v13 = vld [vmem:[#allocation3 + $0x20] sm:$0xff]   ;;  %v473_v32 = vmov 0   ;;  %v283_v43 = vshrl.u32 %v282_v42, 7  ;;  %s474_s25 = smov [#allocation6]  }
  0x15   :  { %376 = vmatprep.subr.bf16.mxu1 %v471_v1  ;;  %383 = vmatpush3.bf16.msra.mxu0 %v416_v7  ;;  %v50_v10 = vld [vmem:[%s559_s0] sm:$0xff]  ;;  %vm326_vm5 = vcmask 57344  }
  0x16   :  { %384 = vmatprep.subr.bf16.mxu0 %v471_v1  ;;  %v51_v12 = vpack.c.bf16 %v50_v10, %v50_v10  ;;  %v420_v14 = vld [vmem:[#allocation3 + $0x18] sm:$0xff]   ;;  %v423_v17 = vld [vmem:[#allocation3] sm:$0xff]   ;;  %415 = vset.pattern.permute.xlu0 %v473_v32  ;;  %v284_v44 = vsub.s32 0, %v283_v43 }
  0x17   :  { %373 = vmatmul.mubr.msk.bf16.vlgmr.msra.gmra.mxu1 %vm56_vm3, %v54_v6  ;;  %v345_v23 = vld [vmem:[%s563_s4] ss:$0 sm:$0xff] }
  0x18   :  { %377 = vmatpush3.bf16.msra.mxu1 %v110_v8  ;;  %378 = vmatprep.mubr.msk.bf16.mxu1 %vm472_vm0, %v471_v1  ;;  %v276_v31 = vld [vmem:[#allocation2] sm:$0x1] }
  0x19   :  { %385 = vmatpush3.bf16.msra.mxu0 %v417_v9  ;;  %402 = vmatprep.subr.bf16.mxu1 %v471_v1  ;;  %v346_v33 = vld [vmem:[%s565_s6] ss:$0 sm:$0xff]  ;;  %s334_s6 = sshll.u32 %s474_s25, 4  ;;  %s335_s6 = int_to_ptr.vmem [resolvable:$true] %s334_s6 }
  0x1a   :  { %386 = vmatprep.subr.bf16.mxu0 %v471_v1  ;;  %279 = vperm.xlu0 %415, %v276_v31   ;;  %v274_v41 = vld [vmem:[%s566_s7] sm:$0x1]  ;;  %s444_s26 = scalar_lea.vmem %s335_s6, 16  ;;  %s448_s27 = scalar_lea.vmem %s335_s6, 32 }
  0x1b   :  { %p445_p5 = scmp.ne.s32.totalorder %s335_s6, %s444_s26  ;;  %p449_p6 = scmp.lt.s32.totalorder %s335_s6, %s335_s6 }
  0x1c   :  { %p450_p7 = scmp.lt.s32.totalorder %s448_s27, %s444_s26 }
  0x1d   :  { %387 = vmatpush3.bf16.msra.mxu0 %v418_v11 }
  0x1e   :  { %388 = vmatprep.subr.bf16.mxu0 %v471_v1  ;;  %p451_p8 = por %p450_p7, %p449_p6 }
  0x1f   :  { %379 = vmatmul.mubr.msk.bf16.vlgmr.msra.gmra.mxu1 %vm104_vm4, %v51_v12 }
  0x20   :  { %404 = vmatprep.mubr.msk.bf16.mxu1 %vm472_vm0, %v471_v1  ;;  %p452_p9 = pnand %p451_p8, %p445_p5 }
  0x21   :  { %389 = vmatpush3.bf16.msra.mxu0 %v419_v13 }
  0x22   :  { %390 = vmatprep.subr.bf16.mxu0 %v471_v1 }
  0x25   :  { %391 = vmatpush3.bf16.msra.mxu0 %v420_v14 }
  0x26   :  { %392 = vmatprep.subr.bf16.mxu0 %v471_v1 }
  0x29   :  { %393 = vmatpush3.bf16.msra.mxu0 %v421_v15 }
  0x2a   :  { %394 = vmatprep.subr.bf16.mxu0 %v471_v1 }
  0x2d   :  { %395 = vmatpush3.bf16.msra.mxu0 %v422_v16 }
  0x2e   :  { %396 = vmatprep.subr.bf16.mxu0 %v471_v1 }
  0x31   :  { %397 = vmatpush3.bf16.msra.mxu0 %v423_v17 }
  0x95   :  { %v280_v45 = vpop.permute.xlu0 %279 }
  0x96   :  { %v285_v46 = vrot.slane %v280_v45, %v284_v44 }
  0xd7   :  { %v98_v18 = vpop.f32.mrf.mxu1 }
  0xd9   :  { %v374_v19 = vpop.f32.mrf.mxu1 }
  0xdb   :  { %v101_v20 = vpop.f32.mrf.mxu1 }
  0xdd   :  { %v375_v21 = vpop.f32.mrf.mxu1 }
  0xdf   :  { %v146_v22 = vpop.f32.mrf.mxu1 }
  0xe0   :  { %v147_v24 = vadd.f32 %v146_v22, %v98_v18 }
  0xe1   :  { %v380_v25 = vpop.f32.mrf.mxu1 }
  0xe2   :  { %v159_v26 = vadd.f32 %v345_v23, %v147_v24 }
  0xe3   :  { %v149_v27 = vpop.f32.mrf.mxu1 }
  0xe4   :  { %v160_v28 = vmax.f32 %v159_v26, 0.0 }
  0xe5   :  { %v381_v29 = vpop.f32.mrf.mxu1 }
  0xe6   :  { %v161_v30 = vpack.c.bf16 %v160_v28, %v160_v28 }
  0xe8   :  { %399 = vmatmul.mubr.bf16.vlgmr.msra.gmra.mxu0 %v161_v30 }
 0x1a8   :  { %v267_v34 = vpop.f32.mrf.mxu0 }
 0x1a9   :  { %v268_v35 = vadd.f32 %v346_v33, %v267_v34 }
 0x1aa   :  { %v400_v36 = vpop.f32.mrf.mxu0 }
 0x1ab   :  { %v273_v37 = vmax.f32 %v268_v35, 0.0 }
 0x1ac   :  { %v270_v38 = vpop.f32.mrf.mxu0 }
 0x1ad   :  { %v275_v39 = vpack.c.bf16 %v273_v37, %v273_v37 }
 0x1ae   :  { %v401_v40 = vpop.f32.mrf.mxu0 }
 0x1af   :  { %403 = vmatpush3.bf16.xpose.msra.mxu1 %v275_v39 }
 0x1b6   :  { %405 = vmatmul.mubr.bf16.vlgmr.msra.gmra.mxu1 %v274_v41 }
 0x276   :  { %v320_v47 = vpop.f32.mrf.mxu1 }
 0x277   :  { %v321_v48 = vadd.f32 %v320_v47, %v285_v46 }
 0x278   :  { %v406_v49 = vpop.f32.mrf.mxu1 }
 0x279   :  { %327 = vst.msk [vmem:[#allocation6] sm:$0x1] %vm326_vm5, %v321_v48 }
 0x27a   :  { %v323_v50 = vpop.f32.mrf.mxu1 }
 0x27b   :  { %455 = shalt.err (!%p452_p9)
}
 0x27c   :  { %337 = dma.vmem_to_hbm [thread:$0]  %s335_s6, 16, %s568_s9, [#allocation5]   ;;  %v407_v51 = vpop.f32.mrf.mxu1 }
 0x27d   :  { %466 = dma.done.wait [#allocation5], 16  }
 0x27e   :  { %467 = vsyncadd [#allocation5], 4294967280 }
 0x27f   :  { %341 = vsyncpa [#allocation4], 1 }
 0x280   :  { %342 = vsyncpa [#allocation5], 1 }

</bundles_post_ra>
